<compile_context>
chip_gen: v7x
topology: tpu7x:2x2x1
jax: 0.10.0
libtpu: 0.0.40
codegen_flags: <defaults>
</compile_context>

<pallas_src>
import math
from functools import partial

import jax
import jax.numpy as jnp
from jax.experimental import pallas as pl
from jax.experimental.pallas import tpu as pltpu

VOCAB_SIZE = 16384
EMBED_SIZE = 256
_VMEM_LIMIT = 48 * 1024 * 1024        # leave headroom on v7x (64 MiB / TC)
_TILE_TARGET_ELEMS = 1 << 20          # ~2 MiB bf16 per activation row tile


def _round_up(x, m):
    return ((x + m - 1) // m) * m


def _pick_tile_rows(H, W, C):
    """Largest power-of-two divisor of H giving ~_TILE_TARGET_ELEMS per tile."""
    th = max(1, min(H, _TILE_TARGET_ELEMS // max(1, W * C)))
    t = 1
    while t * 2 <= th and H % (t * 2) == 0:
        t *= 2
    return t


def _stats_to_affine(s, ss, gamma, beta, hw):
    """(sum, sum-of-squares) per (batch, channel) -> GroupNorm scale/shift."""
    B, _, C = s.shape
    G = 32
    cs = C // G
    cnt = float(hw * cs)
    s_g = s.reshape(B, G, cs).sum(-1)
    ss_g = ss.reshape(B, G, cs).sum(-1)
    mean = s_g / cnt
    var = jnp.maximum(ss_g / cnt - mean * mean, 0.0)
    inv = jax.lax.rsqrt(var + 1e-5)
    a = jnp.repeat(inv, cs, axis=1) * gamma[None, :]
    c = beta[None, :] - jnp.repeat(mean, cs, axis=1) * a
    return a.reshape(B, 1, C), c.reshape(B, 1, C)


# ----------------------------------------------------------------------------
# Fused 3x3 conv kernel:
#   optional GroupNorm-apply + swish on the (haloed) input tile, 9 tap matmuls,
#   optional residual add (raw or through a fused 1x1 nin projection), and
#   per-channel sum / sum-of-squares side outputs for the next GroupNorm.
#   The haloed input tile comes from HBM via a manual double-buffered DMA.
# ----------------------------------------------------------------------------
def _make_conv3x3_kernel(TH_in, Wp, Cin, TH_out, W_out, Cout_k, Cout,
                         norm_in, swish_in, res_ch, has_nin, upsample,
                         want_stats):
    def kernel(*refs):
        i = 0
        x_hbm = refs[i]; i += 1
        if norm_in:
            a_ref, c_ref = refs[i], refs[i + 1]; i += 2
        w_ref, b_ref = refs[i], refs[i + 1]; i += 2
        if res_ch:
            r_ref = refs[i]; i += 1
        if has_nin:
            nw_ref, nb_ref = refs[i], refs[i + 1]; i += 2
        y_ref = refs[i]; i += 1
        if want_stats:
            s_ref, ss_ref = refs[i], refs[i + 1]; i += 2
        xbuf, sem = refs[i], refs[i + 1]

        b_i = pl.program_id(0)
        t = pl.program_id(1)
        nt = pl.num_programs(1)

        def start(tt, slot):
            pltpu.make_async_copy(
                x_hbm.at[b_i, pl.ds(tt * TH_in, TH_in + 2)],
                xbuf.at[slot], sem.at[slot]).start()

        @pl.when(t == 0)
        def _():
            start(0, 0)
            if want_stats:
                s_ref[...] = jnp.zeros_like(s_ref)
                ss_ref[...] = jnp.zeros_like(ss_ref)

        @pl.when(t + 1 < nt)
        def _():
            start(t + 1, (t + 1) % 2)

        slot = t % 2
        pltpu.make_async_copy(
            x_hbm.at[b_i, pl.ds(0, TH_in + 2)],
            xbuf.at[slot], sem.at[slot]).wait()

        x = xbuf[slot]                               # (TH_in+2, Wp, Cin) bf16
        if norm_in:
            xf = x.astype(jnp.float32)
            xf = (xf * a_ref[...].reshape(1, 1, Cin)
                  + c_ref[...].reshape(1, 1, Cin))
            if swish_in:
                xf = xf * (1.0 / (1.0 + jnp.exp(-xf)))
            # The conv's zero padding must stay zero after norm/swish: mask the
            # left/right halo columns and the top/bottom rows at image borders.
            col = jax.lax.broadcasted_iota(jnp.int32, (TH_in + 2, Wp, 1), 1)
            row = jax.lax.broadcasted_iota(jnp.int32, (TH_in + 2, Wp, 1), 0)
            keep = jnp.logical_and(col >= 1, col <= W_out)
            keep = jnp.logical_and(keep, jnp.logical_or(row != 0, t != 0))
            keep = jnp.logical_and(
                keep, jnp.logical_or(row != TH_in + 1, t != nt - 1))
            xn = jnp.where(keep, xf, 0.0).astype(jnp.bfloat16)
        else:
            xn = x

        if upsample:
            # nearest-2x row duplication in VMEM (columns were expanded in XLA)
            xn = jnp.broadcast_to(
                xn[:, None], (TH_in + 2, 2, Wp, Cin)).reshape(
                    2 * (TH_in + 2), Wp, Cin)
            roff = 1
        else:
            roff = 0

        acc = jnp.zeros((TH_out * W_out, Cout_k), jnp.float32)
        for dy in range(3):
            for dx in range(3):
                xs = xn[roff + dy:roff + dy + TH_out,
                        dx:dx + W_out, :].reshape(TH_out * W_out, Cin)
                acc = acc + jnp.dot(xs, w_ref[dy * 3 + dx],
                                    preferred_element_type=jnp.float32)
        acc = acc + b_ref[...]
        if res_ch:
            r = r_ref[...].reshape(TH_out * W_out, res_ch)
            if has_nin:
                acc = acc + jnp.dot(r, nw_ref[...],
                                    preferred_element_type=jnp.float32)
                acc = acc + nb_ref[...]
            else:
                acc = acc + r.astype(jnp.float32)
        if Cout != Cout_k:
            acc = acc[:, :Cout]
        if want_stats:
            s_ref[...] += jnp.sum(acc, axis=0).reshape(1, Cout)
            ss_ref[...] += jnp.sum(acc * acc, axis=0).reshape(1, Cout)
        y_ref[...] = acc.reshape(TH_out, W_out, Cout).astype(y_ref.dtype)

    return kernel


@partial(jax.jit, static_argnames=("swish_in", "upsample", "want_stats"))
def fused_conv3x3(x, w, b, gamma=None, beta=None, in_s=None, in_ss=None,
                  res=None, nin_w=None, nin_b=None, *,
                  swish_in=False, upsample=False, want_stats=True):
    B, H, W, Cin = x.shape
    Cout = w.shape[-1]
    Cout_k = _round_up(max(Cout, 128), 128)
    norm_in = gamma is not None

    if upsample:
        H_out, W_out = 2 * H, 2 * W
        xg = jnp.broadcast_to(x[:, :, :, None, :],
                              (B, H, W, 2, Cin)).reshape(B, H, 2 * W, Cin)
    else:
        H_out, W_out = H, W
        xg = x
    Wp = _round_up(W_out + 2, 16)
    xp = jnp.pad(xg, ((0, 0), (1, 1), (1, Wp - W_out - 1), (0, 0)))

    TH_out = _pick_tile_rows(H_out, W_out, max(Cin, Cout_k))
    if upsample:
        TH_out = max(TH_out, 2)
    nT = H_out // TH_out
    TH_in = TH_out // 2 if upsample else TH_out

    w9 = w.reshape(9, Cin, Cout)
    b2 = b.astype(jnp.float32).reshape(1, Cout)
    if Cout_k != Cout:
        w9 = jnp.pad(w9, ((0, 0), (0, 0), (0, Cout_k - Cout)))
        b2 = jnp.pad(b2, ((0, 0), (0, Cout_k - Cout)))

    specs = [pl.BlockSpec(memory_space=pl.ANY)]
    args = [xp]
    if norm_in:
        a, c = _stats_to_affine(in_s, in_ss, gamma, beta, H * W)
        vec_spec = pl.BlockSpec((None, 1, Cin), lambda bb, tt: (bb, 0, 0))
        specs += [vec_spec, vec_spec]
        args += [a, c]
    specs += [pl.BlockSpec((9, Cin, Cout_k), lambda bb, tt: (0, 0, 0)),
              pl.BlockSpec((1, Cout_k), lambda bb, tt: (0, 0))]
    args += [w9, b2]

    res_ch = 0
    if res is not None:
        res_ch = res.shape[-1]
        specs.append(pl.BlockSpec((None, TH_out, W_out, res_ch),
                                  lambda bb, tt: (bb, tt, 0, 0)))
        args.append(res)
    has_nin = nin_w is not None
    if has_nin:
        nw = nin_w
        nb = nin_b.astype(jnp.float32).reshape(1, Cout)
        if Cout_k != Cout:
            nw = jnp.pad(nw, ((0, 0), (0, Cout_k - Cout)))
            nb = jnp.pad(nb, ((0, 0), (0, Cout_k - Cout)))
        specs += [pl.BlockSpec((res_ch, Cout_k), lambda bb, tt: (0, 0)),
                  pl.BlockSpec((1, Cout_k), lambda bb, tt: (0, 0))]
        args += [nw, nb]

    out_shapes = [jax.ShapeDtypeStruct((B, H_out, W_out, Cout), jnp.bfloat16)]
    out_specs = [pl.BlockSpec((None, TH_out, W_out, Cout),
                              lambda bb, tt: (bb, tt, 0, 0))]
    if want_stats:
        stat_shape = jax.ShapeDtypeStruct((B, 1, Cout), jnp.float32)
        stat_spec = pl.BlockSpec((None, 1, Cout), lambda bb, tt: (bb, 0, 0))
        out_shapes += [stat_shape, stat_shape]
        out_specs += [stat_spec, stat_spec]

    kern = _make_conv3x3_kernel(TH_in, Wp, Cin, TH_out, W_out, Cout_k, Cout,
                                norm_in, swish_in, res_ch, has_nin, upsample,
                                want_stats)
    outs = pl.pallas_call(
        kern,
        out_shape=tuple(out_shapes),
        grid=(B, nT),
        in_specs=specs,
        out_specs=tuple(out_specs),
        scratch_shapes=[pltpu.VMEM((2, TH_in + 2, Wp, Cin), jnp.bfloat16),
                        pltpu.SemaphoreType.DMA((2,))],
        compiler_params=pltpu.CompilerParams(
            dimension_semantics=("parallel", "arbitrary"),
            vmem_limit_bytes=_VMEM_LIMIT),
    )(*args)
    if want_stats:
        return outs[0], outs[1], outs[2]
    return outs[0]


# ----------------------------------------------------------------------------
# Fused AttentionBlock kernel (16x16 stage): GroupNorm apply, q/k/v 1x1 convs,
# softmax attention, proj 1x1, residual add, output stats -- one pallas_call.
# ----------------------------------------------------------------------------
def _make_attn_kernel(L, C, scale):
    def kernel(x_ref, a_ref, c_ref, wq_ref, bq_ref, wk_ref, bk_ref,
               wv_ref, bv_ref, wp_ref, bp_ref, y_ref, s_ref, ss_ref):
        x = x_ref[...].reshape(L, C).astype(jnp.float32)
        h = (x * a_ref[...].reshape(1, C) + c_ref[...].reshape(1, C))
        h = h.astype(jnp.bfloat16)
        q = jnp.dot(h, wq_ref[...], preferred_element_type=jnp.float32) + bq_ref[...]
        k = jnp.dot(h, wk_ref[...], preferred_element_type=jnp.float32) + bk_ref[...]
        v = jnp.dot(h, wv_ref[...], preferred_element_type=jnp.float32) + bv_ref[...]
        s = jax.lax.dot_general(
            q.astype(jnp.bfloat16), k.astype(jnp.bfloat16),
            (((1,), (1,)), ((), ())),
            preferred_element_type=jnp.float32) * scale
        m = jnp.max(s, axis=-1, keepdims=True)
        e = jnp.exp(s - m)
        p = e * pl.reciprocal(jnp.sum(e, axis=-1, keepdims=True), approx=True)
        o = jnp.dot(p.astype(jnp.bfloat16), v.astype(jnp.bfloat16),
                    preferred_element_type=jnp.float32)
        o = jnp.dot(o.astype(jnp.bfloat16), wp_ref[...],
                    preferred_element_type=jnp.float32) + bp_ref[...]
        y = x + o
        s_ref[...] = jnp.sum(y, axis=0).reshape(1, C)
        ss_ref[...] = jnp.sum(y * y, axis=0).reshape(1, C)
        y_ref[...] = y.reshape(y_ref.shape).astype(y_ref.dtype)
    return kernel


@jax.jit
def fused_attention(x, in_s, in_ss, gamma, beta,
                    wq, bq, wk, bk, wv, bv, wp, bp):
    B, H, W, C = x.shape
    L = H * W
    a, c = _stats_to_affine(in_s, in_ss, gamma, beta, H * W)
    scale = 1.0 / math.sqrt(C)
    vec = lambda v: v.astype(jnp.float32).reshape(1, C)
    x_spec = pl.BlockSpec((None, H, W, C), lambda bb: (bb, 0, 0, 0))
    ac_spec = pl.BlockSpec((None, 1, C), lambda bb: (bb, 0, 0))
    w_spec = pl.BlockSpec((C, C), lambda bb: (0, 0))
    b_spec = pl.BlockSpec((1, C), lambda bb: (0, 0))
    outs = pl.pallas_call(
        _make_attn_kernel(L, C, scale),
        out_shape=(jax.ShapeDtypeStruct((B, H, W, C), jnp.bfloat16),
                   jax.ShapeDtypeStruct((B, 1, C), jnp.float32),
                   jax.ShapeDtypeStruct((B, 1, C), jnp.float32)),
        grid=(B,),
        in_specs=[x_spec, ac_spec, ac_spec,
                  w_spec, b_spec, w_spec, b_spec,
                  w_spec, b_spec, w_spec, b_spec],
        out_specs=(x_spec, ac_spec, ac_spec),
        compiler_params=pltpu.CompilerParams(
            dimension_semantics=("parallel",),
            vmem_limit_bytes=_VMEM_LIMIT),
    )(x, a, c, wq, vec(bq), wk, vec(bk), wv, vec(bv), wp, vec(bp))
    return outs[0], outs[1], outs[2]


# ----------------------------------------------------------------------------
# 1x1 conv (post_quant only)
# ----------------------------------------------------------------------------
def _conv1x1_kernel(x_ref, w_ref, b_ref, o_ref):
    acc = jnp.dot(x_ref[...], w_ref[...], preferred_element_type=jnp.float32)
    o_ref[...] = (acc + b_ref[...]).astype(o_ref.dtype)


@jax.jit
def conv1x1(x, w, b):
    B, H, W, Cin = x.shape
    Cout = w.shape[-1]
    M = B * H * W
    TM = min(M, 2048)
    while M % TM:
        TM //= 2
    out = pl.pallas_call(
        _conv1x1_kernel,
        out_shape=jax.ShapeDtypeStruct((M, Cout), jnp.bfloat16),
        grid=(M // TM,),
        in_specs=[pl.BlockSpec((TM, Cin), lambda i: (i, 0)),
                  pl.BlockSpec((Cin, Cout), lambda i: (0, 0)),
                  pl.BlockSpec((1, Cout), lambda i: (0, 0))],
        out_specs=pl.BlockSpec((TM, Cout), lambda i: (i, 0)),
        compiler_params=pltpu.CompilerParams(
            dimension_semantics=("parallel",),
            vmem_limit_bytes=_VMEM_LIMIT),
    )(x.reshape(M, Cin), w, b.astype(jnp.float32).reshape(1, Cout))
    return out.reshape(B, H, W, Cout)


# ----------------------------------------------------------------------------
# Module forwards (JAX orchestration of the Pallas kernels)
# ----------------------------------------------------------------------------
def resnet_block(x, x_s, x_ss, p):
    h, h_s, h_ss = fused_conv3x3(
        x, p["conv1"]["w"], p["conv1"]["b"],
        gamma=p["norm1"]["gamma"], beta=p["norm1"]["beta"],
        in_s=x_s, in_ss=x_ss, swish_in=True)
    nin = p["nin"]
    return fused_conv3x3(
        h, p["conv2"]["w"], p["conv2"]["b"],
        gamma=p["norm2"]["gamma"], beta=p["norm2"]["beta"],
        in_s=h_s, in_ss=h_ss, res=x,
        nin_w=None if nin is None else nin["w"],
        nin_b=None if nin is None else nin["b"],
        swish_in=True)


def attention_block(x, x_s, x_ss, p):
    return fused_attention(x, x_s, x_ss, p["norm"]["gamma"], p["norm"]["beta"],
                           p["q"]["w"], p["q"]["b"], p["k"]["w"], p["k"]["b"],
                           p["v"]["w"], p["v"]["b"],
                           p["proj"]["w"], p["proj"]["b"])


def upsample_module(x, p):
    # PyTorch's `.to(torch.float32)` before the upsample is represented by the
    # f32 accumulation inside the fused conv (storage stays bf16).
    return fused_conv3x3(x, p["conv"]["w"], p["conv"]["b"], upsample=True)


def decoder_forward(z, p):
    z, s, ss = fused_conv3x3(z, p["conv_in"]["w"], p["conv_in"]["b"])
    z, s, ss = resnet_block(z, s, ss, p["mid"]["block_1"])
    z, s, ss = attention_block(z, s, ss, p["mid"]["attn_1"])
    z, s, ss = resnet_block(z, s, ss, p["mid"]["block_2"])
    for up in p["up"][::-1]:
        for i, blk in enumerate(up["block"]):
            z, s, ss = resnet_block(z, s, ss, blk)
            if up["attn"] is not None:
                z, s, ss = attention_block(z, s, ss, up["attn"][i])
        if up["upsample"] is not None:
            z, s, ss = upsample_module(z, up["upsample"])
    return fused_conv3x3(z, p["conv_out"]["w"], p["conv_out"]["b"],
                         gamma=p["norm_out"]["gamma"],
                         beta=p["norm_out"]["beta"],
                         in_s=s, in_ss=ss, swish_in=True, want_stats=False)


def vqgan_detokenize(tokens, params):
    tokens = jnp.clip(tokens, 0, VOCAB_SIZE - 1)
    grid_n = int(math.isqrt(tokens.shape[0]))
    # TODO(synk): embedding gather stays as an XLA gather (pure data movement).
    z = jnp.take(params["embedding"], tokens, axis=0)        # (B, 256, 256)
    z = z.reshape(tokens.shape[0], 16, 16, EMBED_SIZE)        # NHWC
    z = conv1x1(z, params["post_quant"]["w"], params["post_quant"]["b"])
    z = decoder_forward(z, params["decoder"])                 # (B,256,256,3)
    z = jnp.clip(z.astype(jnp.float32), 0.0, 1.0) * 255.0
    z = z.reshape(grid_n, grid_n, 256, 256, 3)
    z = z.reshape(grid_n, grid_n * 256, 256, 3)               # flatten(1, 2)
    z = jnp.swapaxes(z, 0, 1)                                 # transpose(1, 0)
    z = z.reshape(grid_n * 256, grid_n * 256, 3)              # flatten(1, 2)
    return z


# ----------------------------------------------------------------------------
# Deterministic synthetic parameter initialization
# ----------------------------------------------------------------------------
def init_params(key):
    keys = iter(jax.random.split(key, 256))
    bf = jnp.bfloat16

    def gn(c):
        return {"gamma": jnp.ones((c,), jnp.float32),
                "beta": jnp.zeros((c,), jnp.float32)}

    def conv3(cin, cout):
        w = 0.05 * jax.random.normal(next(keys), (3, 3, cin, cout), jnp.float32)
        b = 0.01 * jax.random.normal(next(keys), (cout,), jnp.float32)
        return {"w": w.astype(bf), "b": b}

    def conv1(cin, cout):
        w = 0.05 * jax.random.normal(next(keys), (cin, cout), jnp.float32)
        b = 0.01 * jax.random.normal(next(keys), (cout,), jnp.float32)
        return {"w": w.astype(bf), "b": b}

    def resnet(l_in, l_out):
        m, n = 2 ** l_in, 2 ** l_out
        return {"norm1": gn(m), "conv1": conv3(m, n),
                "norm2": gn(n), "conv2": conv3(n, n),
                "nin": None if m == n else conv1(m, n)}

    def attn():
        return {"norm": gn(512), "q": conv1(512, 512), "k": conv1(512, 512),
                "v": conv1(512, 512), "proj": conv1(512, 512)}

    def upblock(l_in, l_out, has_attn, has_up):
        n = 2 ** l_out
        return {"block": [resnet(l_in, l_out), resnet(l_out, l_out),
                          resnet(l_out, l_out)],
                "attn": [attn(), attn(), attn()] if has_attn else None,
                "upsample": {"conv": conv3(n, n)} if has_up else None}

    decoder = {
        "conv_in": conv3(256, 512),
        "mid": {"block_1": resnet(9, 9), "attn_1": attn(),
                "block_2": resnet(9, 9)},
        "up": [upblock(7, 7, False, False), upblock(8, 7, False, True),
               upblock(8, 8, False, True), upblock(9, 8, False, True),
               upblock(9, 9, True, True)],
        "norm_out": gn(128),
        "conv_out": conv3(128, 3),
    }
    emb = 0.02 * jax.random.normal(next(keys), (VOCAB_SIZE, EMBED_SIZE),
                                   jnp.float32)
    return {"embedding": emb.astype(bf),
            "post_quant": conv1(EMBED_SIZE, EMBED_SIZE),
            "decoder": decoder}


if __name__ == "__main__":
    key = jax.random.PRNGKey(0)
    pkey, tkey = jax.random.split(key)
    params = init_params(pkey)

    # Input: (batch, 256) token ids; batch must be a perfect square (grid of
    # 16x16-token tiles).  Smallest case: batch=1 -> one 256x256x3 image.
    tokens = jax.random.randint(tkey, (1, 256), 0, VOCAB_SIZE, dtype=jnp.int32)

    out = vqgan_detokenize(tokens, params)
    out = jax.block_until_ready(out)

    assert out.shape == (256, 256, 3), out.shape
    assert bool(jnp.all(jnp.isfinite(out)))
    assert float(jnp.min(out)) >= 0.0 and float(jnp.max(out)) <= 255.0
    print("KERNEL_OK")
</pallas_src>

<mosaic_0001>
module attributes {stable_mosaic.version = 11 : i64} {
  func.func @_conv1x1_kernel(%arg0: i32, %arg1: memref<256x256xbf16, #tpu.memory_space<vmem>>, %arg2: memref<256x256xbf16, #tpu.memory_space<vmem>>, %arg3: memref<1x256xf32, #tpu.memory_space<vmem>>, %arg4: memref<256x256xbf16, #tpu.memory_space<vmem>>) attributes {dimension_semantics = [#tpu.dimension_semantics<parallel>], iteration_bounds = array<i64: 1>, scalar_prefetch = 0 : i64, scratch_operands = 0 : i64, tpu.core_type = #tpu.core_type<tc>, window_params = [{transform_indices = @transform_0, window_bounds = array<i64: 256, 256>}, {pipeline_mode = #tpu.pipeline_mode<synchronous>, transform_indices = @transform_1, window_bounds = array<i64: 256, 256>}, {pipeline_mode = #tpu.pipeline_mode<synchronous>, transform_indices = @transform_2, window_bounds = array<i64: 1, 256>}, {transform_indices = @transform_3, window_bounds = array<i64: 256, 256>}]} {
    %c0 = arith.constant 0 : index
    %c0_0 = arith.constant 0 : index
    %0 = vector.load %arg1[%c0, %c0_0] : memref<256x256xbf16, #tpu.memory_space<vmem>>, vector<256x256xbf16>
    %c0_1 = arith.constant 0 : index
    %c0_2 = arith.constant 0 : index
    %1 = vector.load %arg2[%c0_1, %c0_2] : memref<256x256xbf16, #tpu.memory_space<vmem>>, vector<256x256xbf16>
    %cst = arith.constant dense<0.000000e+00> : vector<256x256xf32>
    %2 = tpu.matmul %0, %1, %cst {dimension_numbers = #tpu.dot_dimension_numbers<[1], [0], [0], [1], [0, 0, 1, 1], [], []>} : vector<256x256xbf16>, vector<256x256xbf16>, vector<256x256xf32> -> vector<256x256xf32>
    %c0_3 = arith.constant 0 : index
    %c0_4 = arith.constant 0 : index
    %3 = vector.load %arg3[%c0_3, %c0_4] : memref<1x256xf32, #tpu.memory_space<vmem>>, vector<1x256xf32>
    %4 = vector.broadcast %3 : vector<1x256xf32> to vector<256x256xf32>
    %5 = arith.addf %2, %4 : vector<256x256xf32>
    %6 = arith.truncf %5 : vector<256x256xf32> to vector<256x256xbf16>
    %c0_5 = arith.constant 0 : index
    %c0_6 = arith.constant 0 : index
    %7 = vector.load %arg4[%c0_5, %c0_6] : memref<256x256xbf16, #tpu.memory_space<vmem>>, vector<256x256xbf16>
    tpu.vector_store %arg4[%c0_5, %c0_6], %6 {strides = array<i32>} : memref<256x256xbf16, #tpu.memory_space<vmem>>, vector<256x256xbf16>,
    return
  }
  func.func @transform_0(%arg0: i32) -> (i32, i32) {
    %c0_i32 = arith.constant 0 : i32
    %c0_i32_0 = arith.constant 0 : i32
    return %arg0, %c0_i32 : i32, i32
  }
  func.func @transform_1(%arg0: i32) -> (i32, i32) {
    %c0_i32 = arith.constant 0 : i32
    %c0_i32_0 = arith.constant 0 : i32
    %c0_i32_1 = arith.constant 0 : i32
    return %c0_i32, %c0_i32_0 : i32, i32
  }
  func.func @transform_2(%arg0: i32) -> (i32, i32) {
    %c0_i32 = arith.constant 0 : i32
    %c0_i32_0 = arith.constant 0 : i32
    %c0_i32_1 = arith.constant 0 : i32
    return %c0_i32, %c0_i32_0 : i32, i32
  }
  func.func @transform_3(%arg0: i32) -> (i32, i32) {
    %c0_i32 = arith.constant 0 : i32
    %c0_i32_0 = arith.constant 0 : i32
    return %arg0, %c0_i32 : i32, i32
  }
}

</mosaic_0001>

<bundles_post_ra>
// kernel: conv1x1.1
= control target key start
LH: loop header
LB: loop body
LE: loop exit
PB: predicated region body
PF: predicated region fallthrough
CT: control target
= control target key end

     0   :  { %8 = vsyncpa [#allocation3], 0  ;;  %s1348_s0 = inlined_call_operand.hbm [shape: bf16[256,256], index: 0, kind: input, shape index: {}]   ;;  %s1349_s1 = inlined_call_operand.hbm [shape: bf16[256,256], index: 1, kind: input, shape index: {}]   ;;  %s1350_s2 = inlined_call_operand.vmem [shape: f32[1,256], index: 2, kind: input, shape index: {}]   ;;  %s1351_s3 = inlined_call_operand.hbm [shape: bf16[256,256], index: 3, kind: output, shape index: {}]  }
   0x1   :  { %9 = vsyncpa [#allocation6], 0 }
   0x2   :  { %10 = vsyncpa [#allocation4], 0  ;;  %s1207_s12 = smov [#allocation2]   ;;  %s1135_s16 = scalar_lea.hbm %s1348_s0, 4096 }
   0x3   :  { %s16_s13 = sshll.u32 %s1207_s12, 4  ;;  %p1136_p0 = scmp.ne.s32.totalorder %s1348_s0, %s1135_s16  ;;  %s17_s13 = int_to_ptr.vmem [resolvable:$true] %s16_s13 }
   0x4   :  { %p1139_p1 = scmp.lt.u32.totalorder %s1135_s16, %s1348_s0 }
   0x6   :  { %p1141_p2 = pnand %p1139_p1, %p1136_p0 }
   0x8   :  { %1144 = shalt.err (!%p1141_p2)
}
   0x9   :  { %s1145_s21 = scalar_lea.vmem %s17_s13, 4096  ;;  %p1150_p4 = scmp.lt.s32.totalorder %s17_s13, %s17_s13 }
   0xa   :  { %p1146_p3 = scmp.ne.s32.totalorder %s17_s13, %s1145_s21  ;;  %p1151_p5 = scmp.lt.s32.totalorder %s1145_s21, %s1145_s21 }
   0xc   :  { %p1152_p6 = por %p1151_p5, %p1150_p4 }
   0xe   :  { %p1153_p7 = pnand %p1152_p6, %p1146_p3 }
  0x10   :  { %1156 = shalt.err (!%p1153_p7)
}
  0x11   :  { %s1208_s22 = smov 128   ;;  %s1209_s23 = smov 8  }
  0x12   :  { %22 = dma.hbm_to_vmem [thread:$0]  %s1348_s0, 4096, %s17_s13, [#allocation3], %s1208_s22, %s1208_s22, %s1209_s23  }
  0x13   :  { %s1210_s26 = smov [#allocation5]   ;;  %s1157_s30 = scalar_lea.hbm %s1349_s1, 4096 }
  0x14   :  { %s28_s27 = sshll.u32 %s1210_s26, 4  ;;  %p1158_p8 = scmp.ne.s32.totalorder %s1349_s1, %s1157_s30  ;;  %s29_s27 = int_to_ptr.vmem [resolvable:$true] %s28_s27 }
  0x15   :  { %p1161_p9 = scmp.lt.u32.totalorder %s1157_s30, %s1349_s1 }
  0x17   :  { %p1163_p10 = pnand %p1161_p9, %p1158_p8 }
  0x19   :  { %1166 = shalt.err (!%p1163_p10)
}
  0x1a   :  { %s1167_s8 = scalar_lea.vmem %s29_s27, 4096  ;;  %p1172_p12 = scmp.lt.s32.totalorder %s29_s27, %s29_s27 }
  0x1b   :  { %p1168_p11 = scmp.ne.s32.totalorder %s29_s27, %s1167_s8  ;;  %p1173_p13 = scmp.lt.s32.totalorder %s1167_s8, %s1167_s8 }
  0x1d   :  { %p1174_p0 = por %p1173_p13, %p1172_p12 }
  0x1f   :  { %p1175_p1 = pnand %p1174_p0, %p1168_p11 }
  0x21   :  { %1178 = shalt.err (!%p1175_p1)
}
  0x22   :  { %34 = dma.hbm_to_vmem [thread:$0]  %s1349_s1, 4096, %s29_s27, [#allocation6], %s1208_s22, %s1208_s22, %s1209_s23  }
  0x23   :  { %1201 = dma.done.wait [#allocation3], 4096  }
  0x24   :  { %1202 = vsyncadd [#allocation3], 4294963200 }
  0x25   :  { %1203 = dma.done.wait [#allocation6], 4096  }
  0x26   :  { %1204 = vsyncadd [#allocation6], 4294963200  ;;  %v1039_v0 = vld [vmem:[#allocation5 + $0x4] ss:$8 sps:$4 sm:$0xff]   ;;  %v1041_v1 = vld [vmem:[#allocation5] ss:$8 sps:$4 sm:$0xff]  }
  0x27   :  { %439 = vmatprep.subr.bf16.mxu0 %v1039_v0  ;;  %1002 = vmatprep.subr.bf16.mxu1 %v1039_v0  ;;  %v1042_v2 = vld [vmem:[#allocation5 + $0x14] ss:$8 sps:$4 sm:$0xff]   ;;  %v1044_v3 = vld [vmem:[#allocation5 + $0x10] ss:$8 sps:$4 sm:$0xff]   ;;  %v1045_v4 = vld [vmem:[#allocation5 + $0x24] ss:$8 sps:$4 sm:$0xff]   ;;  %v109_v0 = vlaneseq }
  0x28   :  { %440 = vmatpush1.bf16.msra.mxu0 %v1041_v1  ;;  %1018 = vmatpush1.bf16.msra.mxu1 %v1041_v1  ;;  %v1047_v5 = vld [vmem:[#allocation5 + $0x20] ss:$8 sps:$4 sm:$0xff]   ;;  %v1048_v6 = vld [vmem:[#allocation5 + $0x34] ss:$8 sps:$4 sm:$0xff]   ;;  %v1050_v7 = vld [vmem:[#allocation5 + $0x30] ss:$8 sps:$4 sm:$0xff]  }
  0x29   :  { %441 = vmatprep.subr.bf16.mxu0 %v1042_v2  ;;  %1003 = vmatprep.subr.bf16.mxu1 %v1042_v2  ;;  %v1051_v8 = vld [vmem:[#allocation5 + $0x44] ss:$8 sps:$4 sm:$0xff]   ;;  %v1053_v9 = vld [vmem:[#allocation5 + $0x40] ss:$8 sps:$4 sm:$0xff]   ;;  %v1054_v10 = vld [vmem:[#allocation5 + $0x54] ss:$8 sps:$4 sm:$0xff]  }
  0x2a   :  { %v1056_v11 = vld [vmem:[#allocation5 + $0x50] ss:$8 sps:$4 sm:$0xff]   ;;  %v1057_v12 = vld [vmem:[#allocation5 + $0x64] ss:$8 sps:$4 sm:$0xff]   ;;  %v1059_v14 = vld [vmem:[#allocation5 + $0x60] ss:$8 sps:$4 sm:$0xff]  }
  0x2b   :  { %v1089_v13 = vld [vmem:[#allocation2 + $0x4] ss:$8 sps:$4 sm:$0xff]   ;;  %v1060_v16 = vld [vmem:[#allocation5 + $0x74] ss:$8 sps:$4 sm:$0xff]   ;;  %v1062_v17 = vld [vmem:[#allocation5 + $0x70] ss:$8 sps:$4 sm:$0xff]  }
  0x2c   :  { %442 = vmatpush1.bf16.msra.mxu0 %v1044_v3  ;;  %1019 = vmatpush1.bf16.msra.mxu1 %v1044_v3  ;;  %v1092_v15 = vld [vmem:[#allocation2 + $0x84] ss:$8 sps:$4 sm:$0xff]   ;;  %v1065_v19 = vld [vmem:[#allocation5 + $0x80] ss:$8 sps:$4 sm:$0xff]   ;;  %v1066_v20 = vld [vmem:[#allocation5 + $0x94] ss:$8 sps:$4 sm:$0xff]  }
  0x2d   :  { %443 = vmatprep.subr.bf16.mxu0 %v1045_v4  ;;  %1004 = vmatprep.subr.bf16.mxu1 %v1045_v4  ;;  %v1063_v18 = vld [vmem:[#allocation5 + $0x84] ss:$8 sps:$4 sm:$0xff]   ;;  %v1068_v21 = vld [vmem:[#allocation5 + $0x90] ss:$8 sps:$4 sm:$0xff]   ;;  %v1071_v23 = vld [vmem:[#allocation5 + $0xa0] ss:$8 sps:$4 sm:$0xff]  }
  0x2e   :  { %471 = vmatprep.mubr.bf16.mxu0 %v1089_v13  ;;  %551 = vmatprep.mubr.bf16.mxu1 %v1092_v15  ;;  %v1069_v22 = vld [vmem:[#allocation5 + $0xa4] ss:$8 sps:$4 sm:$0xff]   ;;  %v1072_v24 = vld [vmem:[#allocation5 + $0xb4] ss:$8 sps:$4 sm:$0xff]   ;;  %v1074_v25 = vld [vmem:[#allocation5 + $0xb0] ss:$8 sps:$4 sm:$0xff]  }
  0x2f   :  { %v1075_v26 = vld [vmem:[#allocation5 + $0xc4] ss:$8 sps:$4 sm:$0xff]   ;;  %v1077_v27 = vld [vmem:[#allocation5 + $0xc0] ss:$8 sps:$4 sm:$0xff]   ;;  %v1078_v28 = vld [vmem:[#allocation5 + $0xd4] ss:$8 sps:$4 sm:$0xff]  }
  0x30   :  { %444 = vmatpush1.bf16.msra.mxu0 %v1047_v5  ;;  %1020 = vmatpush1.bf16.msra.mxu1 %v1047_v5  ;;  %v1080_v29 = vld [vmem:[#allocation5 + $0xd0] ss:$8 sps:$4 sm:$0xff]   ;;  %v1081_v30 = vld [vmem:[#allocation5 + $0xe4] ss:$8 sps:$4 sm:$0xff]   ;;  %v1083_v31 = vld [vmem:[#allocation5 + $0xe0] ss:$8 sps:$4 sm:$0xff]  }
  0x31   :  { %445 = vmatprep.subr.bf16.mxu0 %v1048_v6  ;;  %1005 = vmatprep.subr.bf16.mxu1 %v1048_v6  ;;  %v1084_v32 = vld [vmem:[#allocation5 + $0xf4] ss:$8 sps:$4 sm:$0xff]   ;;  %v1086_v33 = vld [vmem:[#allocation5 + $0xf0] ss:$8 sps:$4 sm:$0xff]   ;;  %v1087_v34 = vld [vmem:[#allocation2] ss:$8 sps:$4 sm:$0xff]  }
  0x32   :  { %v1090_v35 = vld [vmem:[#allocation2 + $0x80] ss:$8 sps:$4 sm:$0xff]   ;;  %v1093_v36 = vld [vmem:[#allocation2 + $0x14] ss:$8 sps:$4 sm:$0xff]   ;;  %v1097_v38 = vld [vmem:[#allocation2 + $0x10] ss:$8 sps:$4 sm:$0xff]  }
  0x33   :  { %v1095_v37 = vld [vmem:[#allocation2 + $0x94] ss:$8 sps:$4 sm:$0xff]   ;;  %v1098_v39 = vld [vmem:[#allocation2 + $0x90] ss:$8 sps:$4 sm:$0xff]   ;;  %v1099_v40 = vld [vmem:[#allocation2 + $0x24] ss:$8 sps:$4 sm:$0xff]  }
  0x34   :  { %446 = vmatpush1.bf16.msra.mxu0 %v1050_v7  ;;  %1021 = vmatpush1.bf16.msra.mxu1 %v1050_v7  ;;  %v1101_v41 = vld [vmem:[#allocation2 + $0xa4] ss:$8 sps:$4 sm:$0xff]   ;;  %v1103_v42 = vld [vmem:[#allocation2 + $0x20] ss:$8 sps:$4 sm:$0xff]   ;;  %v1105_v44 = vld [vmem:[#allocation2 + $0x34] ss:$8 sps:$4 sm:$0xff]  }
  0x35   :  { %447 = vmatprep.subr.bf16.mxu0 %v1051_v8  ;;  %1006 = vmatprep.subr.bf16.mxu1 %v1051_v8  ;;  %v1104_v43 = vld [vmem:[#allocation2 + $0xa0] ss:$8 sps:$4 sm:$0xff]   ;;  %v1107_v45 = vld [vmem:[#allocation2 + $0xb4] ss:$8 sps:$4 sm:$0xff]   ;;  %v1109_v46 = vld [vmem:[#allocation2 + $0x30] ss:$8 sps:$4 sm:$0xff]  }
  0x36   :  { %v1110_v47 = vld [vmem:[#allocation2 + $0xb0] ss:$8 sps:$4 sm:$0xff]   ;;  %v1111_v48 = vld [vmem:[#allocation2 + $0x44] ss:$8 sps:$4 sm:$0xff]   ;;  %v1115_v50 = vld [vmem:[#allocation2 + $0x40] ss:$8 sps:$4 sm:$0xff]  }
  0x37   :  { %v1113_v49 = vld [vmem:[#allocation2 + $0xc4] ss:$8 sps:$4 sm:$0xff]   ;;  %v1116_v51 = vld [vmem:[#allocation2 + $0xc0] ss:$8 sps:$4 sm:$0xff]   ;;  %v1117_v52 = vld [vmem:[#allocation2 + $0x54] ss:$8 sps:$4 sm:$0xff]  }
  0x38   :  { %448 = vmatpush1.bf16.msra.mxu0 %v1053_v9  ;;  %1022 = vmatpush1.bf16.msra.mxu1 %v1053_v9  ;;  %v1119_v53 = vld [vmem:[#allocation2 + $0xd4] ss:$8 sps:$4 sm:$0xff]   ;;  %v1121_v54 = vld [vmem:[#allocation2 + $0x50] ss:$8 sps:$4 sm:$0xff]   ;;  %v1123_v56 = vld [vmem:[#allocation2 + $0x64] ss:$8 sps:$4 sm:$0xff]  }
  0x39   :  { %449 = vmatprep.subr.bf16.mxu0 %v1054_v10  ;;  %1007 = vmatprep.subr.bf16.mxu1 %v1054_v10  ;;  %v1122_v55 = vld [vmem:[#allocation2 + $0xd0] ss:$8 sps:$4 sm:$0xff]   ;;  %v1125_v57 = vld [vmem:[#allocation2 + $0xe4] ss:$8 sps:$4 sm:$0xff]   ;;  %v1127_v58 = vld [vmem:[#allocation2 + $0x60] ss:$8 sps:$4 sm:$0xff]  }
  0x3a   :  { %v1128_v59 = vld [vmem:[#allocation2 + $0xe0] ss:$8 sps:$4 sm:$0xff]   ;;  %v1129_v60 = vld [vmem:[#allocation2 + $0x74] ss:$8 sps:$4 sm:$0xff]   ;;  %v1133_v62 = vld [vmem:[#allocation2 + $0x70] ss:$8 sps:$4 sm:$0xff]  }
  0x3b   :  { %v1131_v61 = vld [vmem:[#allocation2 + $0xf4] ss:$8 sps:$4 sm:$0xff]   ;;  %v1134_v63 = vld [vmem:[#allocation2 + $0xf0] ss:$8 sps:$4 sm:$0xff]   ;;  %v110_v1 = vshrl.u32 %v109_v0, 7 }
  0x3c   :  { %450 = vmatpush1.bf16.msra.mxu0 %v1056_v11  ;;  %1023 = vmatpush1.bf16.msra.mxu1 %v1056_v11  ;;  %v107_v3 = vld [vmem:[%s1350_s2] sm:$0x3]  ;;  %s1211_s2 = smov [#allocation7]  }
  0x3d   :  { %451 = vmatprep.subr.bf16.mxu0 %v1057_v12  ;;  %1008 = vmatprep.subr.bf16.mxu1 %v1057_v12  ;;  %v111_v2 = vsub.s32 0, %v110_v1  ;;  %v115_v4 = vsub.s32 1, %v110_v1  ;;  %s861_s11 = sshll.u32 %s1211_s2, 4  ;;  %s862_s11 = int_to_ptr.vmem [resolvable:$true] %s861_s11 }
  0x3e   :  { %s1179_s12 = scalar_lea.vmem %s862_s11, 4096  ;;  %p1184_p3 = scmp.lt.s32.totalorder %s862_s11, %s862_s11 }
  0x3f   :  { %v1265_v5 = vrot.slane %v107_v3, %v111_v2  ;;  %v1267_v6 = vrot.slane %v107_v3, %v115_v4  ;;  %p1180_p2 = scmp.ne.s32.totalorder %s862_s11, %s1179_s12  ;;  %p1185_p4 = scmp.lt.s32.totalorder %s1179_s12, %s1179_s12 }
  0x40   :  { %452 = vmatpush1.bf16.msra.mxu0 %v1059_v14  ;;  %1024 = vmatpush1.bf16.msra.mxu1 %v1059_v14 }
  0x41   :  { %453 = vmatprep.subr.bf16.mxu0 %v1060_v16  ;;  %1009 = vmatprep.subr.bf16.mxu1 %v1060_v16  ;;  %p1186_p5 = por %p1185_p4, %p1184_p3 }
  0x43   :  { %p1187_p6 = pnand %p1186_p5, %p1180_p2 }
  0x44   :  { %454 = vmatpush1.bf16.msra.mxu0 %v1062_v17  ;;  %1025 = vmatpush1.bf16.msra.mxu1 %v1062_v17 }
  0x45   :  { %455 = vmatprep.subr.bf16.mxu0 %v1063_v18  ;;  %1010 = vmatprep.subr.bf16.mxu1 %v1063_v18 }
  0x48   :  { %456 = vmatpush1.bf16.msra.mxu0 %v1065_v19  ;;  %1026 = vmatpush1.bf16.msra.mxu1 %v1065_v19 }
  0x49   :  { %457 = vmatprep.subr.bf16.mxu0 %v1066_v20  ;;  %1011 = vmatprep.subr.bf16.mxu1 %v1066_v20 }
  0x4c   :  { %458 = vmatpush1.bf16.msra.mxu0 %v1068_v21  ;;  %1027 = vmatpush1.bf16.msra.mxu1 %v1068_v21 }
  0x4d   :  { %459 = vmatprep.subr.bf16.mxu0 %v1069_v22  ;;  %1012 = vmatprep.subr.bf16.mxu1 %v1069_v22 }
  0x50   :  { %460 = vmatpush1.bf16.msra.mxu0 %v1071_v23  ;;  %1028 = vmatpush1.bf16.msra.mxu1 %v1071_v23 }
  0x51   :  { %461 = vmatprep.subr.bf16.mxu0 %v1072_v24  ;;  %1013 = vmatprep.subr.bf16.mxu1 %v1072_v24 }
  0x54   :  { %462 = vmatpush1.bf16.msra.mxu0 %v1074_v25  ;;  %1029 = vmatpush1.bf16.msra.mxu1 %v1074_v25 }
  0x55   :  { %463 = vmatprep.subr.bf16.mxu0 %v1075_v26  ;;  %1014 = vmatprep.subr.bf16.mxu1 %v1075_v26 }
  0x58   :  { %464 = vmatpush1.bf16.msra.mxu0 %v1077_v27  ;;  %1030 = vmatpush1.bf16.msra.mxu1 %v1077_v27 }
  0x59   :  { %465 = vmatprep.subr.bf16.mxu0 %v1078_v28  ;;  %1015 = vmatprep.subr.bf16.mxu1 %v1078_v28 }
  0x5c   :  { %466 = vmatpush1.bf16.msra.mxu0 %v1080_v29  ;;  %1031 = vmatpush1.bf16.msra.mxu1 %v1080_v29 }
  0x5d   :  { %467 = vmatprep.subr.bf16.mxu0 %v1081_v30  ;;  %1016 = vmatprep.subr.bf16.mxu1 %v1081_v30 }
  0x60   :  { %468 = vmatpush1.bf16.msra.mxu0 %v1083_v31  ;;  %1032 = vmatpush1.bf16.msra.mxu1 %v1083_v31 }
  0x61   :  { %469 = vmatprep.subr.bf16.mxu0 %v1084_v32  ;;  %1017 = vmatprep.subr.bf16.mxu1 %v1084_v32 }
  0x64   :  { %470 = vmatpush1.bf16.msra.mxu0 %v1086_v33  ;;  %1033 = vmatpush1.bf16.msra.mxu1 %v1086_v33 }
  0x67   :  { %472 = vmatmul.mubr.bf16.vlgmr.msra.gmra.mrb[0].mxu0 %v1087_v34  ;;  %552 = vmatmul.mubr.bf16.vlgmr.msra.gmra.mrb[0].mxu1 %v1090_v35 }
  0x68   :  { %481 = vmatprep.mubr.bf16.mxu0 %v1093_v36  ;;  %561 = vmatprep.mubr.bf16.mxu1 %v1095_v37 }
  0x6f   :  { %482 = vmatmul.mubr.bf16.gmra.mrb[4].mxu0 %v1097_v38  ;;  %562 = vmatmul.mubr.bf16.gmra.mrb[4].mxu1 %v1098_v39 }
  0x70   :  { %491 = vmatprep.mubr.bf16.mxu0 %v1099_v40  ;;  %571 = vmatprep.mubr.bf16.mxu1 %v1101_v41 }
  0x77   :  { %492 = vmatmul.mubr.bf16.gmra.mrb[8].mxu0 %v1103_v42  ;;  %572 = vmatmul.mubr.bf16.gmra.mrb[8].mxu1 %v1104_v43 }
  0x78   :  { %501 = vmatprep.mubr.bf16.mxu0 %v1105_v44  ;;  %581 = vmatprep.mubr.bf16.mxu1 %v1107_v45 }
  0x7f   :  { %502 = vmatmul.mubr.bf16.gmra.mrb[12].mxu0 %v1109_v46  ;;  %582 = vmatmul.mubr.bf16.gmra.mrb[12].mxu1 %v1110_v47 }
  0x80   :  { %511 = vmatprep.mubr.bf16.mxu0 %v1111_v48  ;;  %591 = vmatprep.mubr.bf16.mxu1 %v1113_v49 }
  0x87   :  { %512 = vmatmul.mubr.bf16.gmra.mrb[16].mxu0 %v1115_v50  ;;  %592 = vmatmul.mubr.bf16.gmra.mrb[16].mxu1 %v1116_v51 }
  0x88   :  { %521 = vmatprep.mubr.bf16.mxu0 %v1117_v52  ;;  %601 = vmatprep.mubr.bf16.mxu1 %v1119_v53 }
  0x8f   :  { %522 = vmatmul.mubr.bf16.gmra.mrb[20].mxu0 %v1121_v54  ;;  %602 = vmatmul.mubr.bf16.gmra.mrb[20].mxu1 %v1122_v55 }
  0x90   :  { %531 = vmatprep.mubr.bf16.mxu0 %v1123_v56  ;;  %611 = vmatprep.mubr.bf16.mxu1 %v1125_v57 }
  0x97   :  { %532 = vmatmul.mubr.bf16.gmra.mrb[24].mxu0 %v1127_v58  ;;  %612 = vmatmul.mubr.bf16.gmra.mrb[24].mxu1 %v1128_v59 }
  0x98   :  { %541 = vmatprep.mubr.bf16.mxu0 %v1129_v60  ;;  %621 = vmatprep.mubr.bf16.mxu1 %v1131_v61 }
  0x9f   :  { %542 = vmatmul.mubr.bf16.gmra.mrb[28].mxu0 %v1133_v62  ;;  %622 = vmatmul.mubr.bf16.gmra.mrb[28].mxu1 %v1134_v63 }
 0x13a   :  { %v473_v7 = vpop.f32.mrb[0].mxu0  ;;  %v553_v8 = vpop.f32.mrb[0].mxu1 }
 0x13b   :  { %v474_v9 = vadd.f32 %v473_v7, %v1265_v5  ;;  %v554_v10 = vadd.f32 %v553_v8, %v1265_v5  ;;  %v475_v11 = vpop.f32.mrb[1].mxu0  ;;  %v555_v12 = vpop.f32.mrb[1].mxu1 }
 0x13c   :  { %v476_v13 = vadd.f32 %v475_v11, %v1267_v6  ;;  %v556_v14 = vadd.f32 %v555_v12, %v1267_v6  ;;  %v477_v15 = vpop.f32.mrb[2].mxu0  ;;  %v557_v16 = vpop.f32.mrb[2].mxu1 }
 0x13d   :  { %v478_v17 = vadd.f32 %v477_v15, %v1265_v5  ;;  %v558_v18 = vadd.f32 %v557_v16, %v1265_v5  ;;  %v479_v19 = vpop.f32.mrb[3].mxu0  ;;  %v559_v20 = vpop.f32.mrb[3].mxu1 }
 0x13e   :  { %v970_v21 = vpack.c.bf16 %v476_v13, %v474_v9  ;;  %v986_v22 = vpack.c.bf16 %v556_v14, %v554_v10  ;;  %v480_v23 = vadd.f32 %v479_v19, %v1267_v6  ;;  %v560_v24 = vadd.f32 %v559_v20, %v1267_v6 }
 0x140   :  { %824 = vst [vmem:[#allocation7] sm:$0xff] %v970_v21  ;;  %840 = vst [vmem:[#allocation7 + $0x80] sm:$0xff] %v986_v22  ;;  %v971_v25 = vpack.c.bf16 %v480_v23, %v478_v17  ;;  %v987_v26 = vpack.c.bf16 %v560_v24, %v558_v18 }
 0x142   :  { %825 = vst [vmem:[#allocation7 + $0x8] sm:$0xff] %v971_v25  ;;  %841 = vst [vmem:[#allocation7 + $0x88] sm:$0xff] %v987_v26  ;;  %v483_v27 = vpop.f32.mrb[4].mxu0  ;;  %v563_v28 = vpop.f32.mrb[4].mxu1 }
 0x143   :  { %v484_v29 = vadd.f32 %v483_v27, %v1265_v5  ;;  %v564_v30 = vadd.f32 %v563_v28, %v1265_v5  ;;  %v485_v31 = vpop.f32.mrb[5].mxu0  ;;  %v565_v32 = vpop.f32.mrb[5].mxu1 }
 0x144   :  { %v486_v33 = vadd.f32 %v485_v31, %v1267_v6  ;;  %v566_v34 = vadd.f32 %v565_v32, %v1267_v6  ;;  %v487_v35 = vpop.f32.mrb[6].mxu0  ;;  %v567_v36 = vpop.f32.mrb[6].mxu1 }
 0x145   :  { %v488_v37 = vadd.f32 %v487_v35, %v1265_v5  ;;  %v568_v38 = vadd.f32 %v567_v36, %v1265_v5  ;;  %v489_v39 = vpop.f32.mrb[7].mxu0  ;;  %v569_v40 = vpop.f32.mrb[7].mxu1 }
 0x146   :  { %v972_v41 = vpack.c.bf16 %v486_v33, %v484_v29  ;;  %v988_v42 = vpack.c.bf16 %v566_v34, %v564_v30  ;;  %v490_v43 = vadd.f32 %v489_v39, %v1267_v6  ;;  %v570_v44 = vadd.f32 %v569_v40, %v1267_v6 }
 0x148   :  { %826 = vst [vmem:[#allocation7 + $0x10] sm:$0xff] %v972_v41  ;;  %842 = vst [vmem:[#allocation7 + $0x90] sm:$0xff] %v988_v42  ;;  %v973_v45 = vpack.c.bf16 %v490_v43, %v488_v37  ;;  %v989_v46 = vpack.c.bf16 %v570_v44, %v568_v38 }
 0x14a   :  { %827 = vst [vmem:[#allocation7 + $0x18] sm:$0xff] %v973_v45  ;;  %843 = vst [vmem:[#allocation7 + $0x98] sm:$0xff] %v989_v46  ;;  %v493_v47 = vpop.f32.mrb[8].mxu0  ;;  %v573_v48 = vpop.f32.mrb[8].mxu1 }
 0x14b   :  { %v494_v49 = vadd.f32 %v493_v47, %v1265_v5  ;;  %v574_v50 = vadd.f32 %v573_v48, %v1265_v5  ;;  %v495_v51 = vpop.f32.mrb[9].mxu0  ;;  %v575_v52 = vpop.f32.mrb[9].mxu1 }
 0x14c   :  { %v496_v53 = vadd.f32 %v495_v51, %v1267_v6  ;;  %v576_v54 = vadd.f32 %v575_v52, %v1267_v6  ;;  %v497_v55 = vpop.f32.mrb[10].mxu0  ;;  %v577_v56 = vpop.f32.mrb[10].mxu1 }
 0x14d   :  { %v498_v57 = vadd.f32 %v497_v55, %v1265_v5  ;;  %v578_v58 = vadd.f32 %v577_v56, %v1265_v5  ;;  %v499_v59 = vpop.f32.mrb[11].mxu0  ;;  %v579_v60 = vpop.f32.mrb[11].mxu1 }
 0x14e   :  { %v974_v61 = vpack.c.bf16 %v496_v53, %v494_v49  ;;  %v990_v62 = vpack.c.bf16 %v576_v54, %v574_v50  ;;  %v500_v63 = vadd.f32 %v499_v59, %v1267_v6  ;;  %v580_v0 = vadd.f32 %v579_v60, %v1267_v6 }
 0x150   :  { %828 = vst [vmem:[#allocation7 + $0x20] sm:$0xff] %v974_v61  ;;  %844 = vst [vmem:[#allocation7 + $0xa0] sm:$0xff] %v990_v62  ;;  %v975_v1 = vpack.c.bf16 %v500_v63, %v498_v57  ;;  %v991_v2 = vpack.c.bf16 %v580_v0, %v578_v58 }
 0x152   :  { %829 = vst [vmem:[#allocation7 + $0x28] sm:$0xff] %v975_v1  ;;  %845 = vst [vmem:[#allocation7 + $0xa8] sm:$0xff] %v991_v2  ;;  %v503_v3 = vpop.f32.mrb[12].mxu0  ;;  %v583_v4 = vpop.f32.mrb[12].mxu1 }
 0x153   :  { %v504_v7 = vadd.f32 %v503_v3, %v1265_v5  ;;  %v584_v8 = vadd.f32 %v583_v4, %v1265_v5  ;;  %v505_v9 = vpop.f32.mrb[13].mxu0  ;;  %v585_v10 = vpop.f32.mrb[13].mxu1 }
 0x154   :  { %v506_v11 = vadd.f32 %v505_v9, %v1267_v6  ;;  %v586_v12 = vadd.f32 %v585_v10, %v1267_v6  ;;  %v507_v13 = vpop.f32.mrb[14].mxu0  ;;  %v587_v14 = vpop.f32.mrb[14].mxu1 }
 0x155   :  { %v508_v15 = vadd.f32 %v507_v13, %v1265_v5  ;;  %v588_v16 = vadd.f32 %v587_v14, %v1265_v5  ;;  %v509_v17 = vpop.f32.mrb[15].mxu0  ;;  %v589_v18 = vpop.f32.mrb[15].mxu1 }
 0x156   :  { %v976_v19 = vpack.c.bf16 %v506_v11, %v504_v7  ;;  %v992_v20 = vpack.c.bf16 %v586_v12, %v584_v8  ;;  %v510_v21 = vadd.f32 %v509_v17, %v1267_v6  ;;  %v590_v22 = vadd.f32 %v589_v18, %v1267_v6 }
 0x158   :  { %830 = vst [vmem:[#allocation7 + $0x30] sm:$0xff] %v976_v19  ;;  %846 = vst [vmem:[#allocation7 + $0xb0] sm:$0xff] %v992_v20  ;;  %v977_v23 = vpack.c.bf16 %v510_v21, %v508_v15  ;;  %v993_v24 = vpack.c.bf16 %v590_v22, %v588_v16 }
 0x15a   :  { %831 = vst [vmem:[#allocation7 + $0x38] sm:$0xff] %v977_v23  ;;  %847 = vst [vmem:[#allocation7 + $0xb8] sm:$0xff] %v993_v24  ;;  %v513_v25 = vpop.f32.mrb[16].mxu0  ;;  %v593_v26 = vpop.f32.mrb[16].mxu1 }
 0x15b   :  { %v514_v27 = vadd.f32 %v513_v25, %v1265_v5  ;;  %v594_v28 = vadd.f32 %v593_v26, %v1265_v5  ;;  %v515_v29 = vpop.f32.mrb[17].mxu0  ;;  %v595_v30 = vpop.f32.mrb[17].mxu1 }
 0x15c   :  { %v516_v31 = vadd.f32 %v515_v29, %v1267_v6  ;;  %v596_v32 = vadd.f32 %v595_v30, %v1267_v6  ;;  %v517_v33 = vpop.f32.mrb[18].mxu0  ;;  %v597_v34 = vpop.f32.mrb[18].mxu1 }
 0x15d   :  { %v518_v35 = vadd.f32 %v517_v33, %v1265_v5  ;;  %v598_v36 = vadd.f32 %v597_v34, %v1265_v5  ;;  %v519_v37 = vpop.f32.mrb[19].mxu0  ;;  %v599_v38 = vpop.f32.mrb[19].mxu1 }
 0x15e   :  { %v978_v39 = vpack.c.bf16 %v516_v31, %v514_v27  ;;  %v994_v40 = vpack.c.bf16 %v596_v32, %v594_v28  ;;  %v520_v41 = vadd.f32 %v519_v37, %v1267_v6  ;;  %v600_v42 = vadd.f32 %v599_v38, %v1267_v6 }
 0x160   :  { %832 = vst [vmem:[#allocation7 + $0x40] sm:$0xff] %v978_v39  ;;  %848 = vst [vmem:[#allocation7 + $0xc0] sm:$0xff] %v994_v40  ;;  %v979_v43 = vpack.c.bf16 %v520_v41, %v518_v35  ;;  %v995_v44 = vpack.c.bf16 %v600_v42, %v598_v36 }
 0x162   :  { %833 = vst [vmem:[#allocation7 + $0x48] sm:$0xff] %v979_v43  ;;  %849 = vst [vmem:[#allocation7 + $0xc8] sm:$0xff] %v995_v44  ;;  %v523_v45 = vpop.f32.mrb[20].mxu0  ;;  %v603_v46 = vpop.f32.mrb[20].mxu1 }
 0x163   :  { %v524_v47 = vadd.f32 %v523_v45, %v1265_v5  ;;  %v604_v48 = vadd.f32 %v603_v46, %v1265_v5  ;;  %v525_v49 = vpop.f32.mrb[21].mxu0  ;;  %v605_v50 = vpop.f32.mrb[21].mxu1 }
 0x164   :  { %v526_v51 = vadd.f32 %v525_v49, %v1267_v6  ;;  %v606_v52 = vadd.f32 %v605_v50, %v1267_v6  ;;  %v527_v53 = vpop.f32.mrb[22].mxu0  ;;  %v607_v54 = vpop.f32.mrb[22].mxu1 }
 0x165   :  { %v528_v55 = vadd.f32 %v527_v53, %v1265_v5  ;;  %v608_v56 = vadd.f32 %v607_v54, %v1265_v5  ;;  %v529_v57 = vpop.f32.mrb[23].mxu0  ;;  %v609_v58 = vpop.f32.mrb[23].mxu1 }
 0x166   :  { %v980_v59 = vpack.c.bf16 %v526_v51, %v524_v47  ;;  %v996_v60 = vpack.c.bf16 %v606_v52, %v604_v48  ;;  %v530_v61 = vadd.f32 %v529_v57, %v1267_v6  ;;  %v610_v62 = vadd.f32 %v609_v58, %v1267_v6 }
 0x168   :  { %834 = vst [vmem:[#allocation7 + $0x50] sm:$0xff] %v980_v59  ;;  %850 = vst [vmem:[#allocation7 + $0xd0] sm:$0xff] %v996_v60  ;;  %v981_v63 = vpack.c.bf16 %v530_v61, %v528_v55  ;;  %v997_v0 = vpack.c.bf16 %v610_v62, %v608_v56 }
 0x16a   :  { %835 = vst [vmem:[#allocation7 + $0x58] sm:$0xff] %v981_v63  ;;  %851 = vst [vmem:[#allocation7 + $0xd8] sm:$0xff] %v997_v0  ;;  %v533_v1 = vpop.f32.mrb[24].mxu0  ;;  %v613_v2 = vpop.f32.mrb[24].mxu1 }
 0x16b   :  { %v534_v3 = vadd.f32 %v533_v1, %v1265_v5  ;;  %v614_v4 = vadd.f32 %v613_v2, %v1265_v5  ;;  %v535_v7 = vpop.f32.mrb[25].mxu0  ;;  %v615_v8 = vpop.f32.mrb[25].mxu1 }
 0x16c   :  { %v536_v9 = vadd.f32 %v535_v7, %v1267_v6  ;;  %v616_v10 = vadd.f32 %v615_v8, %v1267_v6  ;;  %v537_v11 = vpop.f32.mrb[26].mxu0  ;;  %v617_v12 = vpop.f32.mrb[26].mxu1 }
 0x16d   :  { %v538_v13 = vadd.f32 %v537_v11, %v1265_v5  ;;  %v618_v14 = vadd.f32 %v617_v12, %v1265_v5  ;;  %v539_v15 = vpop.f32.mrb[27].mxu0  ;;  %v619_v16 = vpop.f32.mrb[27].mxu1 }
 0x16e   :  { %v982_v17 = vpack.c.bf16 %v536_v9, %v534_v3  ;;  %v998_v18 = vpack.c.bf16 %v616_v10, %v614_v4  ;;  %v540_v19 = vadd.f32 %v539_v15, %v1267_v6  ;;  %v620_v20 = vadd.f32 %v619_v16, %v1267_v6 }
 0x170   :  { %836 = vst [vmem:[#allocation7 + $0x60] sm:$0xff] %v982_v17  ;;  %852 = vst [vmem:[#allocation7 + $0xe0] sm:$0xff] %v998_v18  ;;  %v983_v21 = vpack.c.bf16 %v540_v19, %v538_v13  ;;  %v999_v22 = vpack.c.bf16 %v620_v20, %v618_v14 }
 0x172   :  { %837 = vst [vmem:[#allocation7 + $0x68] sm:$0xff] %v983_v21  ;;  %853 = vst [vmem:[#allocation7 + $0xe8] sm:$0xff] %v999_v22  ;;  %v543_v23 = vpop.f32.mrb[28].mxu0  ;;  %v623_v24 = vpop.f32.mrb[28].mxu1 }
 0x173   :  { %v544_v25 = vadd.f32 %v543_v23, %v1265_v5  ;;  %v624_v26 = vadd.f32 %v623_v24, %v1265_v5  ;;  %v545_v27 = vpop.f32.mrb[29].mxu0  ;;  %v625_v28 = vpop.f32.mrb[29].mxu1 }
 0x174   :  { %v546_v29 = vadd.f32 %v545_v27, %v1267_v6  ;;  %v626_v30 = vadd.f32 %v625_v28, %v1267_v6  ;;  %v547_v31 = vpop.f32.mrb[30].mxu0  ;;  %v627_v32 = vpop.f32.mrb[30].mxu1 }
 0x175   :  { %v548_v33 = vadd.f32 %v547_v31, %v1265_v5  ;;  %v628_v34 = vadd.f32 %v627_v32, %v1265_v5  ;;  %v549_v35 = vpop.f32.mrb[31].mxu0  ;;  %v629_v36 = vpop.f32.mrb[31].mxu1 }
 0x176   :  { %v984_v37 = vpack.c.bf16 %v546_v29, %v544_v25  ;;  %v1000_v38 = vpack.c.bf16 %v626_v30, %v624_v26  ;;  %v550_v39 = vadd.f32 %v549_v35, %v1267_v6  ;;  %v630_v40 = vadd.f32 %v629_v36, %v1267_v6 }
 0x178   :  { %838 = vst [vmem:[#allocation7 + $0x70] sm:$0xff] %v984_v37  ;;  %854 = vst [vmem:[#allocation7 + $0xf0] sm:$0xff] %v1000_v38  ;;  %v985_v41 = vpack.c.bf16 %v550_v39, %v548_v33  ;;  %v1001_v42 = vpack.c.bf16 %v630_v40, %v628_v34 }
 0x17a   :  { %839 = vst [vmem:[#allocation7 + $0x78] sm:$0xff] %v985_v41  ;;  %855 = vst [vmem:[#allocation7 + $0xf8] sm:$0xff] %v1001_v42 }
 0x17b   :  { %1190 = shalt.err (!%p1187_p6)
}
 0x17c   :  { %s1191_s15 = scalar_lea.hbm %s1351_s3, 4096 }
 0x17d   :  { %p1192_p7 = scmp.ne.s32.totalorder %s1351_s3, %s1191_s15  ;;  %p1195_p8 = scmp.lt.u32.totalorder %s1191_s15, %s1351_s3 }
 0x17f   :  { %p1197_p9 = pnand %p1195_p8, %p1192_p7 }
 0x181   :  { %1200 = shalt.err (!%p1197_p9)
}
 0x182   :  { %867 = dma.vmem_to_hbm [thread:$0]  %s862_s11, 4096, %s1351_s3, [#allocation4], %s1208_s22, %s1208_s22, %s1209_s23  }
 0x183   :  { %1205 = dma.done.wait [#allocation4], 4096  }
 0x184   :  { %1206 = vsyncadd [#allocation4], 4294963200 }
 0x185   :  { %871 = vsyncpa [#allocation3], 1 }
 0x186   :  { %872 = vsyncpa [#allocation6], 1 }
 0x187   :  { %873 = vsyncpa [#allocation4], 1 }

</bundles_post_ra>
